<compile_context>
chip_gen: v5e
topology: v5e:2x2
jax: 0.10.0
libtpu: 0.0.40
codegen_flags: <defaults>
</compile_context>

<pallas_src>
import jax
import jax.numpy as jnp
from jax.experimental import pallas as pl
from jax.experimental.pallas import tpu as pltpu


def actor_kernel(x_ref, w1_ref, b1_ref, w2_ref, b2_ref, w3_ref, b3_ref,
                 means_ref):
    x = x_ref[...]
    # Layer 1: Linear + Tanh (dropout = identity in eval mode)
    h1 = jnp.tanh(
        jnp.dot(x, w1_ref[...], preferred_element_type=jnp.float32)
        + b1_ref[...]
    )
    # Layer 2: Linear + Tanh
    h2 = jnp.tanh(
        jnp.dot(h1, w2_ref[...], preferred_element_type=jnp.float32)
        + b2_ref[...]
    )
    # Output layer: Linear -> means
    means = (
        jnp.dot(h2, w3_ref[...], preferred_element_type=jnp.float32)
        + b3_ref[...]
    )
    means_ref[...] = means.astype(means_ref.dtype)


def _round_up(n, m):
    return ((n + m - 1) // m) * m


def _choose_tile_b(B, cap, two_tc):
    """Batch tile (multiple of 8 sublanes).

    Default: as few grid steps as possible (1 step when B <= cap) since
    per-grid-step pipeline overhead dominates this tiny model on 1-TC chips.
    two_tc=True (v7x): force an even step count >= 2 so both TensorCores get
    one balanced tile each via the 'parallel' batch axis.
    """
    Br = _round_up(B, 8)
    cap = _round_up(max(cap, 8), 8)
    if two_tc and Br > 8:
        steps = max(2, -(-Br // cap))
        if steps % 2:
            steps += 1
        return _round_up(-(-Br // steps), 8)
    return min(Br, cap)


def actor_forward(x, params, *, tile_b=1024, two_tc=False):
    """Returns (means [B, A], stds [1, A]) of the action Normal distribution.

    x: [B, state_dim] float32
    params: dict with w1 [S,H], b1 [1,H], w2 [H,H], b2 [1,H],
            w3 [H,A], b3 [1,A], logstds [1,A]

    stds is x-independent; it is returned at shape [1, A] so callers can
    broadcast it lazily against means instead of paying a [B, A] HBM write.
    """
    B, S = x.shape
    H = params["w1"].shape[1]
    A = params["w3"].shape[1]

    w1, b1 = params["w1"], params["b1"]
    w2, b2 = params["w2"], params["b2"]
    w3, b3 = params["w3"], params["b3"]

    tb = _choose_tile_b(B, tile_b, two_tc)
    grid_b = pl.cdiv(B, tb)

    def batched_spec(shape):
        # Tiled along batch; ragged last block handled by Pallas (masked store).
        return pl.BlockSpec(shape, lambda i: (i, 0))

    def resident_spec(shape):
        # Same block for every grid step -> DMA'd once, VMEM-resident.
        return pl.BlockSpec(shape, lambda i: (0, 0))

    cost = pl.CostEstimate(
        flops=2 * B * (S * H + H * H + H * A),
        transcendentals=2 * B * H,
        bytes_accessed=4 * (B * S + S * H + H * H + H * A + 2 * H + A + B * A),
    )

    means = pl.pallas_call(
        actor_kernel,
        out_shape=jax.ShapeDtypeStruct((B, A), jnp.float32),
        grid=(grid_b,),
        in_specs=[
            batched_spec((tb, S)),
            resident_spec((S, H)), resident_spec((1, H)),
            resident_spec((H, H)), resident_spec((1, H)),
            resident_spec((H, A)), resident_spec((1, A)),
        ],
        out_specs=batched_spec((tb, A)),
        compiler_params=pltpu.CompilerParams(
            dimension_semantics=("parallel",)),
        cost_estimate=cost,
    )(x, w1, b1, w2, b2, w3, b3)

    # stds is independent of x: return the [1, A] constant; broadcasting
    # against means at the use site is metadata-only.
    stds = jnp.clip(jnp.exp(params["logstds"]), 0.001, 50.0).astype(jnp.float32)
    return means, stds


def init_params(key, state_dim, n_actions, hidden_size):
    """Deterministic init mimicking PyTorch Linear default (uniform +-1/sqrt(fan_in))."""
    ks = jax.random.split(key, 6)

    def lin(kw, kb, fan_in, fan_out):
        bound = 1.0 / jnp.sqrt(fan_in)
        w = jax.random.uniform(kw, (fan_in, fan_out), jnp.float32, -bound, bound)
        b = jax.random.uniform(kb, (1, fan_out), jnp.float32, -bound, bound)
        return w, b

    w1, b1 = lin(ks[0], ks[1], state_dim, hidden_size)
    w2, b2 = lin(ks[2], ks[3], hidden_size, hidden_size)
    w3, b3 = lin(ks[4], ks[5], hidden_size, n_actions)
    logstds = jnp.full((1, n_actions), 0.01, dtype=jnp.float32)
    return {"w1": w1, "b1": b1, "w2": w2, "b2": b2,
            "w3": w3, "b3": b3, "logstds": logstds}


def actor_reference(x, p):
    h1 = jnp.tanh(x @ p["w1"] + p["b1"])
    h2 = jnp.tanh(h1 @ p["w2"] + p["b2"])
    means = h2 @ p["w3"] + p["b3"]
    stds = jnp.clip(jnp.exp(p["logstds"]), 0.001, 50.0)
    return means, stds


if __name__ == "__main__":
    batch = 2
    state_dim = 16
    n_actions = 4
    hidden_size = 32

    key = jax.random.PRNGKey(0)
    k_x, k_p, k_big = jax.random.split(key, 3)
    x = jax.random.normal(k_x, (batch, state_dim), dtype=jnp.float32)
    params = init_params(k_p, state_dim, n_actions, hidden_size)

    # Small-batch path: single ragged grid step (block rows > batch rows).
    means, stds = actor_forward(x, params)
    jax.block_until_ready((means, stds))

    ref_means, ref_stds = actor_reference(x, params)
    assert means.shape == (batch, n_actions)
    assert stds.shape == (1, n_actions)
    assert jnp.allclose(means, ref_means, atol=1e-5, rtol=1e-5)
    assert jnp.allclose(stds, ref_stds, atol=1e-6, rtol=1e-6)
    # Lazy broadcast against means matches a full [B, A] stds.
    assert jnp.allclose(jnp.broadcast_to(stds, means.shape),
                        jnp.broadcast_to(ref_stds, means.shape))

    # Larger batch: single-step path (1-TC chips) ...
    xb = jax.random.normal(k_big, (1000, state_dim), dtype=jnp.float32)
    mb, sb = actor_forward(xb, params)
    jax.block_until_ready((mb, sb))
    rmb, rsb = actor_reference(xb, params)
    assert mb.shape == (1000, n_actions)
    assert jnp.allclose(mb, rmb, atol=1e-4, rtol=1e-4)
    assert jnp.allclose(sb, rsb, atol=1e-6, rtol=1e-6)

    # ... and the two-TensorCore split (even grid, ragged last block).
    mb2, _ = actor_forward(xb, params, two_tc=True)
    jax.block_until_ready(mb2)
    assert jnp.allclose(mb2, rmb, atol=1e-4, rtol=1e-4)

    print("KERNEL_OK")
</pallas_src>

<mosaic_0001>
module attributes {stable_mosaic.version = 11 : i64} {
  func.func @actor_kernel(%arg0: i32, %arg1: memref<8x16xf32, #tpu.memory_space<vmem>>, %arg2: memref<16x32xf32, #tpu.memory_space<vmem>>, %arg3: memref<1x32xf32, #tpu.memory_space<vmem>>, %arg4: memref<32x32xf32, #tpu.memory_space<vmem>>, %arg5: memref<1x32xf32, #tpu.memory_space<vmem>>, %arg6: memref<32x4xf32, #tpu.memory_space<vmem>>, %arg7: memref<1x4xf32, #tpu.memory_space<vmem>>, %arg8: memref<8x4xf32, #tpu.memory_space<vmem>>) attributes {dimension_semantics = [#tpu.dimension_semantics<parallel>], iteration_bounds = array<i64: 1>, scalar_prefetch = 0 : i64, scratch_operands = 0 : i64, tpu.core_type = #tpu.core_type<tc>, window_params = [{transform_indices = @transform_0, window_bounds = array<i64: 8, 16>}, {pipeline_mode = #tpu.pipeline_mode<synchronous>, transform_indices = @transform_1, window_bounds = array<i64: 16, 32>}, {pipeline_mode = #tpu.pipeline_mode<synchronous>, transform_indices = @transform_2, window_bounds = array<i64: 1, 32>}, {pipeline_mode = #tpu.pipeline_mode<synchronous>, transform_indices = @transform_3, window_bounds = array<i64: 32, 32>}, {pipeline_mode = #tpu.pipeline_mode<synchronous>, transform_indices = @transform_4, window_bounds = array<i64: 1, 32>}, {pipeline_mode = #tpu.pipeline_mode<synchronous>, transform_indices = @transform_5, window_bounds = array<i64: 32, 4>}, {pipeline_mode = #tpu.pipeline_mode<synchronous>, transform_indices = @transform_6, window_bounds = array<i64: 1, 4>}, {transform_indices = @transform_7, window_bounds = array<i64: 8, 4>}]} {
    %c0 = arith.constant 0 : index
    %c0_0 = arith.constant 0 : index
    %0 = vector.load %arg1[%c0, %c0_0] : memref<8x16xf32, #tpu.memory_space<vmem>>, vector<8x16xf32>
    %c0_1 = arith.constant 0 : index
    %c0_2 = arith.constant 0 : index
    %1 = vector.load %arg2[%c0_1, %c0_2] : memref<16x32xf32, #tpu.memory_space<vmem>>, vector<16x32xf32>
    %cst = arith.constant dense<0.000000e+00> : vector<8x32xf32>
    %2 = tpu.matmul %0, %1, %cst {dimension_numbers = #tpu.dot_dimension_numbers<[1], [0], [0], [1], [0, 0, 1, 1], [], []>} : vector<8x16xf32>, vector<16x32xf32>, vector<8x32xf32> -> vector<8x32xf32>
    %c0_3 = arith.constant 0 : index
    %c0_4 = arith.constant 0 : index
    %3 = vector.load %arg3[%c0_3, %c0_4] : memref<1x32xf32, #tpu.memory_space<vmem>>, vector<1x32xf32>
    %4 = vector.broadcast %3 : vector<1x32xf32> to vector<8x32xf32>
    %5 = arith.addf %2, %4 : vector<8x32xf32>
    %6 = math.tanh %5 : vector<8x32xf32>
    %c0_5 = arith.constant 0 : index
    %c0_6 = arith.constant 0 : index
    %7 = vector.load %arg4[%c0_5, %c0_6] : memref<32x32xf32, #tpu.memory_space<vmem>>, vector<32x32xf32>
    %cst_7 = arith.constant dense<0.000000e+00> : vector<8x32xf32>
    %8 = tpu.matmul %6, %7, %cst_7 {dimension_numbers = #tpu.dot_dimension_numbers<[1], [0], [0], [1], [0, 0, 1, 1], [], []>} : vector<8x32xf32>, vector<32x32xf32>, vector<8x32xf32> -> vector<8x32xf32>
    %c0_8 = arith.constant 0 : index
    %c0_9 = arith.constant 0 : index
    %9 = vector.load %arg5[%c0_8, %c0_9] : memref<1x32xf32, #tpu.memory_space<vmem>>, vector<1x32xf32>
    %10 = vector.broadcast %9 : vector<1x32xf32> to vector<8x32xf32>
    %11 = arith.addf %8, %10 : vector<8x32xf32>
    %12 = math.tanh %11 : vector<8x32xf32>
    %c0_10 = arith.constant 0 : index
    %c0_11 = arith.constant 0 : index
    %13 = vector.load %arg6[%c0_10, %c0_11] : memref<32x4xf32, #tpu.memory_space<vmem>>, vector<32x4xf32>
    %cst_12 = arith.constant dense<0.000000e+00> : vector<8x4xf32>
    %14 = tpu.matmul %12, %13, %cst_12 {dimension_numbers = #tpu.dot_dimension_numbers<[1], [0], [0], [1], [0, 0, 1, 1], [], []>} : vector<8x32xf32>, vector<32x4xf32>, vector<8x4xf32> -> vector<8x4xf32>
    %c0_13 = arith.constant 0 : index
    %c0_14 = arith.constant 0 : index
    %15 = vector.load %arg7[%c0_13, %c0_14] : memref<1x4xf32, #tpu.memory_space<vmem>>, vector<1x4xf32>
    %16 = vector.broadcast %15 : vector<1x4xf32> to vector<8x4xf32>
    %17 = arith.addf %14, %16 : vector<8x4xf32>
    %c0_15 = arith.constant 0 : index
    %c0_16 = arith.constant 0 : index
    %18 = vector.load %arg8[%c0_15, %c0_16] : memref<8x4xf32, #tpu.memory_space<vmem>>, vector<8x4xf32>
    tpu.vector_store %arg8[%c0_15, %c0_16], %17 {strides = array<i32>} : memref<8x4xf32, #tpu.memory_space<vmem>>, vector<8x4xf32>,
    return
  }
  func.func @transform_0(%arg0: i32) -> (i32, i32) {
    %c0_i32 = arith.constant 0 : i32
    %c0_i32_0 = arith.constant 0 : i32
    return %arg0, %c0_i32 : i32, i32
  }
  func.func @transform_1(%arg0: i32) -> (i32, i32) {
    %c0_i32 = arith.constant 0 : i32
    %c0_i32_0 = arith.constant 0 : i32
    %c0_i32_1 = arith.constant 0 : i32
    return %c0_i32, %c0_i32_0 : i32, i32
  }
  func.func @transform_2(%arg0: i32) -> (i32, i32) {
    %c0_i32 = arith.constant 0 : i32
    %c0_i32_0 = arith.constant 0 : i32
    %c0_i32_1 = arith.constant 0 : i32
    return %c0_i32, %c0_i32_0 : i32, i32
  }
  func.func @transform_3(%arg0: i32) -> (i32, i32) {
    %c0_i32 = arith.constant 0 : i32
    %c0_i32_0 = arith.constant 0 : i32
    %c0_i32_1 = arith.constant 0 : i32
    return %c0_i32, %c0_i32_0 : i32, i32
  }
  func.func @transform_4(%arg0: i32) -> (i32, i32) {
    %c0_i32 = arith.constant 0 : i32
    %c0_i32_0 = arith.constant 0 : i32
    %c0_i32_1 = arith.constant 0 : i32
    return %c0_i32, %c0_i32_0 : i32, i32
  }
  func.func @transform_5(%arg0: i32) -> (i32, i32) {
    %c0_i32 = arith.constant 0 : i32
    %c0_i32_0 = arith.constant 0 : i32
    %c0_i32_1 = arith.constant 0 : i32
    return %c0_i32, %c0_i32_0 : i32, i32
  }
  func.func @transform_6(%arg0: i32) -> (i32, i32) {
    %c0_i32 = arith.constant 0 : i32
    %c0_i32_0 = arith.constant 0 : i32
    %c0_i32_1 = arith.constant 0 : i32
    return %c0_i32, %c0_i32_0 : i32, i32
  }
  func.func @transform_7(%arg0: i32) -> (i32, i32) {
    %c0_i32 = arith.constant 0 : i32
    %c0_i32_0 = arith.constant 0 : i32
    return %arg0, %c0_i32 : i32, i32
  }
}

</mosaic_0001>

<bundles_post_ra>
// kernel: tpu_custom_call.1
= control target key start
LH: loop header
LB: loop body
LE: loop exit
PB: predicated region body
PF: predicated region fallthrough
CT: control target
= control target key end

     0   :  { %12 = vsyncpa [#allocation3], 0  ;;  %s318_s0 = inlined_call_operand.vmem [shape: f32[2,16], index: 0, kind: input, shape index: {}]   ;;  %s319_s1 = inlined_call_operand.hbm [shape: f32[16,32], index: 1, kind: input, shape index: {}]   ;;  %s320_s2 = inlined_call_operand.vmem [shape: f32[1,32], index: 2, kind: input, shape index: {}]   ;;  %s321_s3 = inlined_call_operand.vmem [shape: f32[32,32], index: 3, kind: input, shape index: {}]   ;;  %s322_s4 = inlined_call_operand.vmem [shape: f32[1,32], index: 4, kind: input, shape index: {}]   ;;  %s323_s5 = inlined_call_operand.vmem [shape: f32[32,4], index: 5, kind: input, shape index: {}]   ;;  %s324_s6 = inlined_call_operand.vmem [shape: f32[1,4], index: 6, kind: input, shape index: {}]   ;;  %s325_s7 = inlined_call_operand.hbm [shape: f32[2,4], index: 7, kind: output, shape index: {}]  }
   0x1   :  { %13 = vsyncpa [#allocation4], 0  ;;  %s20_s26 = sshll.u32 %s319_s1, 4  ;;  %s228_s27 = smov [#allocation2]   ;;  %s21_s26 = int_to_ptr.hbm [resolvable:$true] %s20_s26 }
   0x2   :  { %s22_s28 = sshll.u32 %s228_s27, 4  ;;  %s229_s29 = smov 128   ;;  %s23_s28 = int_to_ptr.vmem [resolvable:$true] %s22_s28 }
   0x3   :  { %s230_s30 = smov 8  }
   0x4   :  { %28 = dma.hbm_to_vmem [thread:$0]  %s21_s26, 256, %s23_s28, [#allocation3], %s229_s29, %s229_s29, %s230_s30  }
   0x5   :  { %224 = dma.done.wait [#allocation3], 256  }
   0x6   :  { %225 = vsyncadd [#allocation3], 4294967040  ;;  %v45_v0 = vld [vmem:[#allocation2 + $0x8] sm:$0xff]  ;;  %v44_v1 = vld [vmem:[#allocation2] sm:$0xff]  ;;  %vm50_vm0 = vcmask 130048   ;;  %vm83_vm1 = vcmask 261120  }
   0x7   :  { %68 = vmatpush.msra.mxu0 %v45_v0  ;;  %v43_v2 = vld [vmem:[%s318_s0] sm:$0xff]  ;;  %v78_v3 = vld [vmem:[%s321_s3 + $0x18] sm:$0xff]  ;;  %v77_v4 = vld [vmem:[%s321_s3 + $0x10] sm:$0xff]  ;;  %vm139_vm2 = vcmask 31744  }
   0x8   :  { %99 = vmatpush.msra.mxu1 %v78_v3  ;;  %v76_v5 = vld [vmem:[%s321_s3 + $0x8] sm:$0xff]  ;;  %v75_v6 = vld [vmem:[%s321_s3] sm:$0xff]  ;;  %v111_v11 = vld [vmem:[%s323_s5 + $0x18] sm:$0xff] }
   0x9   :  { %69 = vmatpush.msra.mxu0 %v44_v1  ;;  %v169_v7 = vld [vmem:[%s320_s2] ss:$0 sm:$0xff]  ;;  %131 = vmatpush.msra.mxu2 %v111_v11  ;;  %v110_v12 = vld [vmem:[%s323_s5 + $0x10] sm:$0xff]  ;;  %v109_v13 = vld [vmem:[%s323_s5 + $0x8] sm:$0xff] }
   0xa   :  { %160 = vmatmul.msk.f32.vlgmr.msra.gmra.mxu0 %vm50_vm0, %v43_v2  ;;  %100 = vmatpush.msra.mxu1 %v77_v4  ;;  %v108_v14 = vld [vmem:[%s323_s5] sm:$0xff] }
   0xb   :  { %132 = vmatpush.msra.mxu2 %v110_v12  ;;  %v170_v15 = vld [vmem:[%s322_s4] ss:$0 sm:$0xff] }
   0xc   :  { %101 = vmatpush.msra.mxu1 %v76_v5  ;;  %v171_v19 = vld [vmem:[%s324_s6] ss:$0 sm:$0xff] }
   0xd   :  { %133 = vmatpush.msra.mxu2 %v109_v13 }
   0xe   :  { %102 = vmatpush.msra.mxu1 %v75_v6 }
   0xf   :  { %134 = vmatpush.msra.mxu2 %v108_v14 }
  0x87   :  { %v71_v8 = vpop.f32.mrf.mxu0 }
  0x88   :  { %v72_v9 = vadd.f32 %v169_v7, %v71_v8 }
  0x8a   :  { %172 = vtanh.f32 %v72_v9 }
  0x90   :  { %v173_v10 = vpop.eup %172 }
  0x91   :  { %161 = vmatmul.msk.f32.vlgmr.msra.gmra.mxu1 %vm83_vm1, %v173_v10 }
 0x10e   :  { %v104_v16 = vpop.f32.mrf.mxu1 }
 0x10f   :  { %v105_v17 = vadd.f32 %v170_v15, %v104_v16 }
 0x111   :  { %174 = vtanh.f32 %v105_v17 }
 0x117   :  { %v175_v18 = vpop.eup %174 }
 0x118   :  { %162 = vmatmul.msk.f32.vlgmr.msra.gmra.mxu2 %vm83_vm1, %v175_v18 }
 0x19b   :  { %v136_v20 = vpop.f32.mrf.mxu2 }
 0x19c   :  { %v137_v21 = vadd.f32 %v171_v19, %v136_v20 }
 0x19e   :  { %140 = vst.msk [vmem:[#allocation5] sm:$0xff] %vm139_vm2, %v137_v21 }
 0x19f   :  { %144 = vsyncadd [#allocation4], 96  ;;  %s147_s29 = sshll.u32 %s325_s7, 4  ;;  %s231_s4 = smov [#allocation5]   ;;  %s148_s29 = int_to_ptr.hbm [resolvable:$true] %s147_s29 }
 0x1a0   :  { %s145_s30 = sshll.u32 %s231_s4, 4  ;;  %s232_s8 = smov 32   ;;  %s146_s30 = int_to_ptr.vmem [resolvable:$true] %s145_s30 }
 0x1a1   :  { %s233_s9 = smov 2  }
 0x1a2   :  { %153 = dma.vmem_to_hbm [thread:$0]  %s146_s30, 32, %s148_s29, [#allocation4], %s232_s8, %s232_s8, %s233_s9  }
 0x1a3   :  { %226 = dma.done.wait [#allocation4], 128  }
 0x1a4   :  { %227 = vsyncadd [#allocation4], 4294967168 }
 0x1a5   :  { %158 = vsyncpa [#allocation3], 1 }
 0x1a6   :  { %159 = vsyncpa [#allocation4], 1 }

</bundles_post_ra>
